<compile_context>
chip_gen: v7x
topology: tpu7x:2x2x1
jax: 0.10.0
libtpu: 0.0.40
codegen_flags: <defaults>
</compile_context>

<pallas_src>
import jax
import jax.numpy as jnp
from jax.experimental import pallas as pl
from jax.experimental.pallas import tpu as pltpu


def _leaky_relu(x, alpha=0.2):
    # alpha in (0, 1) -> leaky_relu(x) == max(x, alpha * x); single VPU max.
    return jnp.maximum(x, alpha * x)


def mlp_kernel(xT_ref,
               w1_ref, b1_ref, w2_ref, b2_ref, w3_ref, b3_ref, w4_ref, b4_ref,
               outT_ref):
    """Transposed-activation MLP: h^T = W @ h^T + b, batch on the lane axis."""
    h = xT_ref[...]                                                    # (nin, TB)
    h = jnp.dot(w1_ref[...], h, preferred_element_type=jnp.float32) + b1_ref[...]
    h = _leaky_relu(h)                                                 # (nh, TB)
    h = jnp.dot(w2_ref[...], h, preferred_element_type=jnp.float32) + b2_ref[...]
    h = _leaky_relu(h)
    h = jnp.dot(w3_ref[...], h, preferred_element_type=jnp.float32) + b3_ref[...]
    h = _leaky_relu(h)
    h = jnp.dot(w4_ref[...], h, preferred_element_type=jnp.float32) + b4_ref[...]
    outT_ref[...] = h.astype(outT_ref.dtype)                          # (nout, TB)


def init_mlp_params(key, nin, nout, nh):
    """4-layer MLP: nin->nh->nh->nh->nout.

    Matches torch.nn.Linear default init: U(-1/sqrt(fan_in), 1/sqrt(fan_in)).
    Weights are kept in the PyTorch layout (out_features, in_features); biases are
    stored as (out_features, 1) so they broadcast over the lane (batch) axis.
    """
    dims = [(nin, nh), (nh, nh), (nh, nh), (nh, nout)]
    keys = jax.random.split(key, 2 * len(dims))
    params = []
    for i, (di, do) in enumerate(dims):
        bound = 1.0 / float(di) ** 0.5
        w = jax.random.uniform(keys[2 * i], (do, di), jnp.float32, -bound, bound)
        b = jax.random.uniform(keys[2 * i + 1], (do, 1), jnp.float32, -bound, bound)
        params += [w, b]
    return params  # w1, b1, w2, b2, w3, b3, w4, b4


def mlp_forward(x, params, *, block_batch=None):
    """Pallas forward pass: y = MLP(x), x is (B, nin) f32, y is (B, nout) f32."""
    w1, b1, w2, b2, w3, b3, w4, b4 = params
    B, nin = x.shape
    nout = w4.shape[0]

    # Batch tile lives on the lane axis -> multiple of 128.
    if block_batch is None:
        block_batch = 1024
    TB = max(128, (block_batch // 128) * 128)
    B_pad128 = ((B + 127) // 128) * 128
    TB = min(TB, B_pad128)

    # Pad the batch so every grid step gets a full (lane-dense) block.
    B_pad = ((B + TB - 1) // TB) * TB
    if B_pad != B:
        x = jnp.pad(x, ((0, B_pad - B), (0, 0)))
    xT = x.T                                   # (nin, B_pad): batch on lanes

    grid = (B_pad // TB,)

    x_spec = pl.BlockSpec((nin, TB), lambda i: (0, i))
    out_spec = pl.BlockSpec((nout, TB), lambda i: (0, i))

    def resident(arr):
        # Same block every grid step -> DMA'd once, stays VMEM-resident.
        return pl.BlockSpec(arr.shape, lambda i: (0, 0))

    weight_args = (w1, b1, w2, b2, w3, b3, w4, b4)
    weight_specs = [resident(a) for a in weight_args]

    yT = pl.pallas_call(
        mlp_kernel,
        out_shape=jax.ShapeDtypeStruct((nout, B_pad), jnp.float32),
        grid_spec=pltpu.PrefetchScalarGridSpec(
            num_scalar_prefetch=0,
            grid=grid,
            in_specs=[x_spec] + weight_specs,
            out_specs=out_spec,
        ),
        compiler_params=pltpu.CompilerParams(
            dimension_semantics=("parallel",),   # shard batch grid across TCs
        ),
    )(xT, *weight_args)

    return yT.T[:B]                             # (B, nout)


def mlp_ref(x, params):
    w1, b1, w2, b2, w3, b3, w4, b4 = params

    def lin(h, w, b):
        return h @ w.T + b[:, 0]

    h = jnp.where(lin(x, w1, b1) > 0, lin(x, w1, b1), 0.2 * lin(x, w1, b1))
    h = jnp.where(lin(h, w2, b2) > 0, lin(h, w2, b2), 0.2 * lin(h, w2, b2))
    h = jnp.where(lin(h, w3, b3) > 0, lin(h, w3, b3), 0.2 * lin(h, w3, b3))
    return lin(h, w4, b4)


if __name__ == "__main__":
    # Small shapes consistent with the module (MLP(nin=8, nout=8, nh=32)).
    batch, nin, nout, nh = 64, 8, 8, 32

    key = jax.random.PRNGKey(0)
    kx, kp = jax.random.split(key)

    x = jax.random.normal(kx, (batch, nin), dtype=jnp.float32)
    params = init_mlp_params(kp, nin, nout, nh)

    # block_batch=128 -> minimum lane-dense tile; batch (64) is padded to 128 and
    # the pad rows are sliced off.  Production sizes would use the 1024-row default.
    y = mlp_forward(x, params, block_batch=128)
    y = jax.block_until_ready(y)

    y_ref = mlp_ref(x, params)
    assert y.shape == (batch, nout)
    assert jnp.allclose(y, y_ref, atol=1e-5, rtol=1e-5)

    print("KERNEL_OK")
</pallas_src>

<mosaic_0001>
module attributes {stable_mosaic.version = 11 : i64} {
  func.func @mlp_kernel(%arg0: i32, %arg1: memref<8x128xf32, #tpu.memory_space<vmem>>, %arg2: memref<32x8xf32, #tpu.memory_space<vmem>>, %arg3: memref<32x1xf32, #tpu.memory_space<vmem>>, %arg4: memref<32x32xf32, #tpu.memory_space<vmem>>, %arg5: memref<32x1xf32, #tpu.memory_space<vmem>>, %arg6: memref<32x32xf32, #tpu.memory_space<vmem>>, %arg7: memref<32x1xf32, #tpu.memory_space<vmem>>, %arg8: memref<8x32xf32, #tpu.memory_space<vmem>>, %arg9: memref<8x1xf32, #tpu.memory_space<vmem>>, %arg10: memref<8x128xf32, #tpu.memory_space<vmem>>) attributes {dimension_semantics = [#tpu.dimension_semantics<parallel>], iteration_bounds = array<i64: 1>, scalar_prefetch = 0 : i64, scratch_operands = 0 : i64, tpu.core_type = #tpu.core_type<tc>, window_params = [{transform_indices = @transform_0, window_bounds = array<i64: 8, 128>}, {pipeline_mode = #tpu.pipeline_mode<synchronous>, transform_indices = @transform_1, window_bounds = array<i64: 32, 8>}, {pipeline_mode = #tpu.pipeline_mode<synchronous>, transform_indices = @transform_2, window_bounds = array<i64: 32, 1>}, {pipeline_mode = #tpu.pipeline_mode<synchronous>, transform_indices = @transform_3, window_bounds = array<i64: 32, 32>}, {pipeline_mode = #tpu.pipeline_mode<synchronous>, transform_indices = @transform_4, window_bounds = array<i64: 32, 1>}, {pipeline_mode = #tpu.pipeline_mode<synchronous>, transform_indices = @transform_5, window_bounds = array<i64: 32, 32>}, {pipeline_mode = #tpu.pipeline_mode<synchronous>, transform_indices = @transform_6, window_bounds = array<i64: 32, 1>}, {pipeline_mode = #tpu.pipeline_mode<synchronous>, transform_indices = @transform_7, window_bounds = array<i64: 8, 32>}, {pipeline_mode = #tpu.pipeline_mode<synchronous>, transform_indices = @transform_8, window_bounds = array<i64: 8, 1>}, {transform_indices = @transform_9, window_bounds = array<i64: 8, 128>}]} {
    %c0 = arith.constant 0 : index
    %c0_0 = arith.constant 0 : index
    %0 = vector.load %arg1[%c0, %c0_0] : memref<8x128xf32, #tpu.memory_space<vmem>>, vector<8x128xf32>
    %c0_1 = arith.constant 0 : index
    %c0_2 = arith.constant 0 : index
    %1 = vector.load %arg2[%c0_1, %c0_2] : memref<32x8xf32, #tpu.memory_space<vmem>>, vector<32x8xf32>
    %cst = arith.constant dense<0.000000e+00> : vector<32x128xf32>
    %2 = tpu.matmul %1, %0, %cst {dimension_numbers = #tpu.dot_dimension_numbers<[1], [0], [0], [1], [0, 0, 1, 1], [], []>} : vector<32x8xf32>, vector<8x128xf32>, vector<32x128xf32> -> vector<32x128xf32>
    %c0_3 = arith.constant 0 : index
    %c0_4 = arith.constant 0 : index
    %3 = vector.load %arg3[%c0_3, %c0_4] : memref<32x1xf32, #tpu.memory_space<vmem>>, vector<32x1xf32>
    %4 = vector.broadcast %3 : vector<32x1xf32> to vector<32x128xf32>
    %5 = arith.addf %2, %4 : vector<32x128xf32>
    %cst_5 = arith.constant 2.000000e-01 : f32
    %6 = vector.broadcast %cst_5 : f32 to vector<32x128xf32>
    %7 = arith.mulf %6, %5 : vector<32x128xf32>
    %8 = arith.maximumf %5, %7 : vector<32x128xf32>
    %c0_6 = arith.constant 0 : index
    %c0_7 = arith.constant 0 : index
    %9 = vector.load %arg4[%c0_6, %c0_7] : memref<32x32xf32, #tpu.memory_space<vmem>>, vector<32x32xf32>
    %cst_8 = arith.constant dense<0.000000e+00> : vector<32x128xf32>
    %10 = tpu.matmul %9, %8, %cst_8 {dimension_numbers = #tpu.dot_dimension_numbers<[1], [0], [0], [1], [0, 0, 1, 1], [], []>} : vector<32x32xf32>, vector<32x128xf32>, vector<32x128xf32> -> vector<32x128xf32>
    %c0_9 = arith.constant 0 : index
    %c0_10 = arith.constant 0 : index
    %11 = vector.load %arg5[%c0_9, %c0_10] : memref<32x1xf32, #tpu.memory_space<vmem>>, vector<32x1xf32>
    %12 = vector.broadcast %11 : vector<32x1xf32> to vector<32x128xf32>
    %13 = arith.addf %10, %12 : vector<32x128xf32>
    %cst_11 = arith.constant 2.000000e-01 : f32
    %14 = vector.broadcast %cst_11 : f32 to vector<32x128xf32>
    %15 = arith.mulf %14, %13 : vector<32x128xf32>
    %16 = arith.maximumf %13, %15 : vector<32x128xf32>
    %c0_12 = arith.constant 0 : index
    %c0_13 = arith.constant 0 : index
    %17 = vector.load %arg6[%c0_12, %c0_13] : memref<32x32xf32, #tpu.memory_space<vmem>>, vector<32x32xf32>
    %cst_14 = arith.constant dense<0.000000e+00> : vector<32x128xf32>
    %18 = tpu.matmul %17, %16, %cst_14 {dimension_numbers = #tpu.dot_dimension_numbers<[1], [0], [0], [1], [0, 0, 1, 1], [], []>} : vector<32x32xf32>, vector<32x128xf32>, vector<32x128xf32> -> vector<32x128xf32>
    %c0_15 = arith.constant 0 : index
    %c0_16 = arith.constant 0 : index
    %19 = vector.load %arg7[%c0_15, %c0_16] : memref<32x1xf32, #tpu.memory_space<vmem>>, vector<32x1xf32>
    %20 = vector.broadcast %19 : vector<32x1xf32> to vector<32x128xf32>
    %21 = arith.addf %18, %20 : vector<32x128xf32>
    %cst_17 = arith.constant 2.000000e-01 : f32
    %22 = vector.broadcast %cst_17 : f32 to vector<32x128xf32>
    %23 = arith.mulf %22, %21 : vector<32x128xf32>
    %24 = arith.maximumf %21, %23 : vector<32x128xf32>
    %c0_18 = arith.constant 0 : index
    %c0_19 = arith.constant 0 : index
    %25 = vector.load %arg8[%c0_18, %c0_19] : memref<8x32xf32, #tpu.memory_space<vmem>>, vector<8x32xf32>
    %cst_20 = arith.constant dense<0.000000e+00> : vector<8x128xf32>
    %26 = tpu.matmul %25, %24, %cst_20 {dimension_numbers = #tpu.dot_dimension_numbers<[1], [0], [0], [1], [0, 0, 1, 1], [], []>} : vector<8x32xf32>, vector<32x128xf32>, vector<8x128xf32> -> vector<8x128xf32>
    %c0_21 = arith.constant 0 : index
    %c0_22 = arith.constant 0 : index
    %27 = vector.load %arg9[%c0_21, %c0_22] : memref<8x1xf32, #tpu.memory_space<vmem>>, vector<8x1xf32>
    %28 = vector.broadcast %27 : vector<8x1xf32> to vector<8x128xf32>
    %29 = arith.addf %26, %28 : vector<8x128xf32>
    %c0_23 = arith.constant 0 : index
    %c0_24 = arith.constant 0 : index
    %30 = vector.load %arg10[%c0_23, %c0_24] : memref<8x128xf32, #tpu.memory_space<vmem>>, vector<8x128xf32>
    tpu.vector_store %arg10[%c0_23, %c0_24], %29 {strides = array<i32>} : memref<8x128xf32, #tpu.memory_space<vmem>>, vector<8x128xf32>,
    return
  }
  func.func @transform_0(%arg0: i32) -> (i32, i32) {
    %c0_i32 = arith.constant 0 : i32
    %c0_i32_0 = arith.constant 0 : i32
    return %c0_i32, %arg0 : i32, i32
  }
  func.func @transform_1(%arg0: i32) -> (i32, i32) {
    %c0_i32 = arith.constant 0 : i32
    %c0_i32_0 = arith.constant 0 : i32
    %c0_i32_1 = arith.constant 0 : i32
    return %c0_i32, %c0_i32_0 : i32, i32
  }
  func.func @transform_2(%arg0: i32) -> (i32, i32) {
    %c0_i32 = arith.constant 0 : i32
    %c0_i32_0 = arith.constant 0 : i32
    %c0_i32_1 = arith.constant 0 : i32
    return %c0_i32, %c0_i32_0 : i32, i32
  }
  func.func @transform_3(%arg0: i32) -> (i32, i32) {
    %c0_i32 = arith.constant 0 : i32
    %c0_i32_0 = arith.constant 0 : i32
    %c0_i32_1 = arith.constant 0 : i32
    return %c0_i32, %c0_i32_0 : i32, i32
  }
  func.func @transform_4(%arg0: i32) -> (i32, i32) {
    %c0_i32 = arith.constant 0 : i32
    %c0_i32_0 = arith.constant 0 : i32
    %c0_i32_1 = arith.constant 0 : i32
    return %c0_i32, %c0_i32_0 : i32, i32
  }
  func.func @transform_5(%arg0: i32) -> (i32, i32) {
    %c0_i32 = arith.constant 0 : i32
    %c0_i32_0 = arith.constant 0 : i32
    %c0_i32_1 = arith.constant 0 : i32
    return %c0_i32, %c0_i32_0 : i32, i32
  }
  func.func @transform_6(%arg0: i32) -> (i32, i32) {
    %c0_i32 = arith.constant 0 : i32
    %c0_i32_0 = arith.constant 0 : i32
    %c0_i32_1 = arith.constant 0 : i32
    return %c0_i32, %c0_i32_0 : i32, i32
  }
  func.func @transform_7(%arg0: i32) -> (i32, i32) {
    %c0_i32 = arith.constant 0 : i32
    %c0_i32_0 = arith.constant 0 : i32
    %c0_i32_1 = arith.constant 0 : i32
    return %c0_i32, %c0_i32_0 : i32, i32
  }
  func.func @transform_8(%arg0: i32) -> (i32, i32) {
    %c0_i32 = arith.constant 0 : i32
    %c0_i32_0 = arith.constant 0 : i32
    %c0_i32_1 = arith.constant 0 : i32
    return %c0_i32, %c0_i32_0 : i32, i32
  }
  func.func @transform_9(%arg0: i32) -> (i32, i32) {
    %c0_i32 = arith.constant 0 : i32
    %c0_i32_0 = arith.constant 0 : i32
    return %c0_i32, %arg0 : i32, i32
  }
}

</mosaic_0001>

<bundles_post_ra>
// kernel: tpu_custom_call.1
= control target key start
LH: loop header
LB: loop body
LE: loop exit
PB: predicated region body
PF: predicated region fallthrough
CT: control target
= control target key end

     0   :  { %vm62_vm0 = vcmask 64512   ;;  %v669_v5 = vmov 0   ;;  %s830_s0 = inlined_call_operand.vmem [shape: f32[8,128], index: 0, kind: input, shape index: {}]   ;;  %s831_s1 = inlined_call_operand.vmem [shape: f32[32,8], index: 1, kind: input, shape index: {}]   ;;  %s832_s2 = inlined_call_operand.vmem [shape: f32[32,1], index: 2, kind: input, shape index: {}]   ;;  %s833_s3 = inlined_call_operand.vmem [shape: f32[32,32], index: 3, kind: input, shape index: {}]   ;;  %s834_s4 = inlined_call_operand.vmem [shape: f32[32,1], index: 4, kind: input, shape index: {}]   ;;  %s835_s5 = inlined_call_operand.vmem [shape: f32[32,32], index: 5, kind: input, shape index: {}]   ;;  %s836_s6 = inlined_call_operand.vmem [shape: f32[32,1], index: 6, kind: input, shape index: {}]   ;;  %s837_s7 = inlined_call_operand.vmem [shape: f32[8,32], index: 7, kind: input, shape index: {}]   ;;  %s838_s8 = inlined_call_operand.vmem [shape: f32[8,1], index: 8, kind: input, shape index: {}]   ;;  %s839_s9 = inlined_call_operand.hbm [shape: f32[8,128], index: 9, kind: output, shape index: {}]  }
   0x1   :  { %v33_v0 = vld [vmem:[%s830_s0] sm:$0xff]  ;;  %v35_v2 = vld [vmem:[%s831_s1 + $0x8] sm:$0xff]  ;;  %v36_v3 = vld [vmem:[%s831_s1 + $0x10] sm:$0xff]  ;;  %643 = vset.pattern.permute.xlu0 %v669_v5  ;;  %644 = vset.pattern.permute.xlu1 %v669_v5 }
   0x2   :  { %v34_v1 = vld [vmem:[%s831_s1] sm:$0xff]  ;;  %569 = vmatprep.subr.mxu0 %v33_v0  ;;  %v40_v6 = vld [vmem:[%s832_s2 + $0x10] sm:$0xff]  ;;  %v37_v7 = vld [vmem:[%s831_s1 + $0x18] sm:$0xff] }
   0x3   :  { %571 = vmatprep.mubr.msk.f32.mxu0 %vm62_vm0, %v34_v1  ;;  %v38_v4 = vld [vmem:[%s832_s2] sm:$0xff]  ;;  %570 = vmatpush3.msra.mxu0 %v33_v0  ;;  %v39_v8 = vld [vmem:[%s832_s2 + $0x8] sm:$0xff]  ;;  %v41_v9 = vld [vmem:[%s832_s2 + $0x18] sm:$0xff] }
   0x4   :  { %572 = vmatmul.mubr.msk.f32.vlgmr.msra.gmra.mrb[0].mxu0 %vm62_vm0, %v35_v2  ;;  %44 = vperm.xlu0 %643, %v38_v4  }
   0x5   :  { %574 = vmatprep.mubr.msk.f32.mxu0 %vm62_vm0, %v36_v3  ;;  %54 = vperm.xlu1 %644, %v40_v6  }
   0x6   :  { %14 = vsyncpa [#allocation3], 0  ;;  %v172_v10 = vld [vmem:[%s834_s4] sm:$0xff]  ;;  %v173_v11 = vld [vmem:[%s834_s4 + $0x8] sm:$0xff]  ;;  %vm196_vm1 = vcmask 261120   ;;  %vm671_vm2 = vmmov 0  }
   0x7   :  { %v174_v12 = vld [vmem:[%s834_s4 + $0x10] sm:$0xff]  ;;  %v175_v13 = vld [vmem:[%s834_s4 + $0x18] sm:$0xff]  ;;  %v306_v14 = vld [vmem:[%s836_s6] sm:$0xff]  ;;  %s673_s10 = smov [#allocation2]  }
   0x8   :  { %575 = vmatmul.mubr.msk.f32.gmra.mrb[2].mxu0 %vm62_vm0, %v37_v7  ;;  %49 = vperm.xlu0 %643, %v39_v8   ;;  %v307_v15 = vld [vmem:[%s836_s6 + $0x8] sm:$0xff]  ;;  %v308_v16 = vld [vmem:[%s836_s6 + $0x10] sm:$0xff]  ;;  %v309_v17 = vld [vmem:[%s836_s6 + $0x18] sm:$0xff]  ;;  %v670_v7 = vmov 0.0|0.0   ;;  %v672_v8 = vmov 0.0   ;;  %s522_s11 = sshll.u32 %s673_s10, 4  ;;  %s523_s11 = int_to_ptr.vmem [resolvable:$true] %s522_s11 }
   0x9   :  { %59 = vperm.xlu1 %644, %v41_v9   ;;  %v436_v18 = vld [vmem:[%s838_s8] sm:$0xff]  ;;  %v169_v42 = vld [vmem:[%s833_s3 + $0x8] sm:$0xff]  ;;  %v170_v43 = vld [vmem:[%s833_s3 + $0x10] sm:$0xff]  ;;  %s645_s12 = scalar_lea.vmem %s523_s11, 128  ;;  %p650_p1 = scmp.lt.s32.totalorder %s523_s11, %s523_s11 }
   0xa   :  { %v168_v19 = vld [vmem:[%s833_s3] sm:$0xff]  ;;  %v171_v44 = vld [vmem:[%s833_s3 + $0x18] sm:$0xff]  ;;  %v303_v4 = vld [vmem:[%s835_s5 + $0x8] sm:$0xff]  ;;  %p646_p0 = scmp.ne.s32.totalorder %s523_s11, %s645_s12  ;;  %p651_p2 = scmp.lt.s32.totalorder %s645_s12, %s645_s12 }
   0xb   :  { %585 = vmatprep.mubr.msk.f32.mxu1 %vm196_vm1, %v168_v19  ;;  %v302_v45 = vld [vmem:[%s835_s5] sm:$0xff]  ;;  %v304_v5 = vld [vmem:[%s835_s5 + $0x10] sm:$0xff]  ;;  %v305_v6 = vld [vmem:[%s835_s5 + $0x18] sm:$0xff] }
   0xc   :  { %178 = vperm.xlu0 %643, %v172_v10   ;;  %599 = vmatprep.mubr.msk.f32.mxu0 %vm196_vm1, %v302_v45  ;;  %p652_p3 = por %p651_p2, %p650_p1 }
   0xd   :  { %183 = vperm.xlu1 %644, %v173_v11  }
   0xe   :  { %p653_p4 = pnand %p652_p3, %p646_p0 }
  0x10   :  { %188 = vperm.xlu0 %643, %v174_v12  }
  0x11   :  { %193 = vperm.xlu1 %644, %v175_v13  }
  0x14   :  { %312 = vperm.xlu0 %643, %v306_v14  }
  0x15   :  { %317 = vperm.xlu1 %644, %v307_v15  }
  0x18   :  { %322 = vperm.xlu0 %643, %v308_v16  }
  0x19   :  { %327 = vperm.xlu1 %644, %v309_v17  }
  0x1c   :  { %439 = vperm.xlu0 %643, %v436_v18  }
  0x83   :  { %v45_v20 = vpop.permute.xlu0 %44 }
  0x84   :  { %v55_v21 = vpop.permute.xlu1 %54 }
  0x87   :  { %v50_v22 = vpop.permute.xlu0 %49 }
  0x88   :  { %v60_v28 = vpop.permute.xlu1 %59 }
  0x8b   :  { %v179_v47 = vpop.permute.xlu0 %178 }
  0x8c   :  { %v184_v46 = vpop.permute.xlu1 %183 }
  0x8f   :  { %v189_v56 = vpop.permute.xlu0 %188 }
  0x90   :  { %v194_v53 = vpop.permute.xlu1 %193 }
  0x93   :  { %v313_v10 = vpop.permute.xlu0 %312 }
  0x94   :  { %v318_v9 = vpop.permute.xlu1 %317 }
  0x97   :  { %v323_v19 = vpop.permute.xlu0 %322 }
  0x98   :  { %v328_v16 = vpop.permute.xlu1 %327 }
  0xd7   :  { %v573_v23 = vpop.f32.mrb[0].mxu0 }
  0xd8   :  { %v147_v24 = vadd.f32 %v573_v23, %v50_v22  ;;  %v141_v25 = vpop.f32.mrb[1].mxu0 }
  0xd9   :  { %v142_v26 = vadd.f32 %v141_v25, %v45_v20 }
  0xda   :  { %v161_v27 = vmul.f32 0.2, %v147_v24 }
  0xdb   :  { %v160_v29 = vmul.f32 0.2, %v142_v26  ;;  %v576_v30 = vpop.f32.mrb[2].mxu0 }
  0xdc   :  { %v165_v31 = vmax.f32 %v147_v24, %v161_v27  ;;  %v157_v32 = vadd.f32 %v576_v30, %v60_v28  ;;  %v151_v33 = vpop.f32.mrb[3].mxu0 }
  0xdd   :  { %v164_v34 = vmax.f32 %v142_v26, %v160_v29  ;;  %v152_v35 = vadd.f32 %v151_v33, %v55_v21 }
  0xde   :  { %v163_v36 = vmul.f32 0.2, %v157_v32 }
  0xdf   :  { %v162_v37 = vmul.f32 0.2, %v152_v35  ;;  %v616_v38 = vpack.c.bf16 %v165_v31, %v164_v34  ;;  %v435_v31 = vld [vmem:[%s837_s7] sm:$0xff] }
  0xe0   :  { %v167_v39 = vmax.f32 %v157_v32, %v163_v36  ;;  %v440_v32 = vpop.permute.xlu0 %439 }
  0xe1   :  { %v166_v40 = vmax.f32 %v152_v35, %v162_v37  ;;  %617 = vmatprep.subr.bf16.mxu1 %v616_v38 }
  0xe2   :  { %619 = vmatpush3.bf16.msra.mxu1 %v616_v38 }
  0xe3   :  { %v620_v41 = vpack.c.bf16 %v167_v39, %v166_v40 }
  0xe5   :  { %621 = vmatprep.subr.bf16.mxu1 %v620_v41 }
  0xe6   :  { %623 = vmatpush3.bf16.msra.mxu1 %v620_v41 }
  0xe7   :  { %632 = vmatprep.subr.bf16.mxu1 %v670_v7 }
  0xe9   :  { %586 = vmatmul.mubr.msk.f32.vlgmr.msra.gmra.mrb[0].mxu1 %vm196_vm1, %v169_v42 }
  0xea   :  { %588 = vmatprep.mubr.msk.f32.mxu1 %vm196_vm1, %v170_v43 }
  0xed   :  { %589 = vmatmul.mubr.msk.f32.gmra.mrb[2].mxu1 %vm196_vm1, %v171_v44 }
  0xee   :  { %613 = vmatprep.mubr.msk.f32.mxu1 %vm671_vm2, %v672_v8 }
 0x1bc   :  { %v587_v48 = vpop.f32.mrb[0].mxu1 }
 0x1bd   :  { %v281_v49 = vadd.f32 %v587_v48, %v184_v46  ;;  %v275_v50 = vpop.f32.mrb[1].mxu1 }
 0x1be   :  { %v276_v51 = vadd.f32 %v275_v50, %v179_v47 }
 0x1bf   :  { %v295_v52 = vmul.f32 0.2, %v281_v49 }
 0x1c0   :  { %v294_v54 = vmul.f32 0.2, %v276_v51  ;;  %v590_v55 = vpop.f32.mrb[2].mxu1 }
 0x1c1   :  { %v299_v57 = vmax.f32 %v281_v49, %v295_v52  ;;  %v291_v58 = vadd.f32 %v590_v55, %v194_v53  ;;  %v285_v59 = vpop.f32.mrb[3].mxu1 }
 0x1c2   :  { %v298_v60 = vmax.f32 %v276_v51, %v294_v54  ;;  %v286_v61 = vadd.f32 %v285_v59, %v189_v56 }
 0x1c3   :  { %v297_v62 = vmul.f32 0.2, %v291_v58 }
 0x1c4   :  { %v296_v63 = vmul.f32 0.2, %v286_v61  ;;  %v624_v0 = vpack.c.bf16 %v299_v57, %v298_v60 }
 0x1c5   :  { %v301_v1 = vmax.f32 %v291_v58, %v297_v62 }
 0x1c6   :  { %v300_v2 = vmax.f32 %v286_v61, %v296_v63  ;;  %625 = vmatprep.subr.bf16.mxu0 %v624_v0 }
 0x1c7   :  { %627 = vmatpush3.bf16.msra.mxu0 %v624_v0 }
 0x1c8   :  { %v628_v3 = vpack.c.bf16 %v301_v1, %v300_v2 }
 0x1ca   :  { %629 = vmatprep.subr.bf16.mxu0 %v628_v3 }
 0x1cb   :  { %631 = vmatpush3.bf16.msra.mxu0 %v628_v3 }
 0x1ce   :  { %600 = vmatmul.mubr.msk.f32.vlgmr.msra.gmra.mrb[4].mxu0 %vm196_vm1, %v303_v4 }
 0x1cf   :  { %602 = vmatprep.mubr.msk.f32.mxu0 %vm196_vm1, %v304_v5 }
 0x1d2   :  { %603 = vmatmul.mubr.msk.f32.gmra.mrb[6].mxu0 %vm196_vm1, %v305_v6 }
 0x2a1   :  { %v601_v11 = vpop.f32.mrb[4].mxu0 }
 0x2a2   :  { %v414_v12 = vadd.f32 %v601_v11, %v318_v9  ;;  %v408_v13 = vpop.f32.mrb[5].mxu0 }
 0x2a3   :  { %v409_v14 = vadd.f32 %v408_v13, %v313_v10 }
 0x2a4   :  { %v428_v15 = vmul.f32 0.2, %v414_v12 }
 0x2a5   :  { %v427_v17 = vmul.f32 0.2, %v409_v14  ;;  %v604_v18 = vpop.f32.mrb[6].mxu0 }
 0x2a6   :  { %v432_v20 = vmax.f32 %v414_v12, %v428_v15  ;;  %v424_v21 = vadd.f32 %v604_v18, %v328_v16  ;;  %v418_v22 = vpop.f32.mrb[7].mxu0 }
 0x2a7   :  { %v431_v23 = vmax.f32 %v409_v14, %v427_v17  ;;  %v419_v24 = vadd.f32 %v418_v22, %v323_v19 }
 0x2a8   :  { %v430_v25 = vmul.f32 0.2, %v424_v21 }
 0x2a9   :  { %v633_v26 = vpack.c.bf16 %v432_v20, %v431_v23  ;;  %v429_v27 = vmul.f32 0.2, %v419_v24 }
 0x2aa   :  { %v434_v28 = vmax.f32 %v424_v21, %v430_v25 }
 0x2ab   :  { %v433_v29 = vmax.f32 %v419_v24, %v429_v27  ;;  %634 = vmatpush3.bf16.msra.mxu1 %v633_v26 }
 0x2ac   :  { %635 = vmatprep.subr.bf16.mxu1 %v670_v7 }
 0x2ad   :  { %v636_v30 = vpack.c.bf16 %v434_v28, %v433_v29 }
 0x2af   :  { %637 = vmatpush3.bf16.msra.mxu1 %v636_v30 }
 0x2b2   :  { %614 = vmatmul.mubr.msk.f32.vlgmr.msra.gmra.mrb[4].mxu1 %vm196_vm1, %v435_v31 }
 0x385   :  { %v511_v33 = vpop.f32.mrb[4].mxu1 }
 0x386   :  { %v512_v34 = vadd.f32 %v511_v33, %v440_v32  ;;  %v615_v35 = vpop.f32.mrb[5].mxu1 }
 0x388   :  { %515 = vst [vmem:[#allocation2] sm:$0xff] %v512_v34 }
 0x389   :  { %656 = shalt.err (!%p653_p4)
}
 0x38a   :  { %s657_s7 = scalar_lea.hbm %s839_s9, 128 }
 0x38b   :  { %p658_p5 = scmp.ne.s32.totalorder %s839_s9, %s657_s7  ;;  %p661_p6 = scmp.lt.u32.totalorder %s657_s7, %s839_s9 }
 0x38d   :  { %p663_p7 = pnand %p661_p6, %p658_p5 }
 0x38f   :  { %666 = shalt.err (!%p663_p7)
}
 0x390   :  { %525 = dma.vmem_to_hbm [thread:$0]  %s523_s11, 128, %s839_s9, [#allocation3]  }
 0x391   :  { %667 = dma.done.wait [#allocation3], 128  }
 0x392   :  { %668 = vsyncadd [#allocation3], 4294967168 }
 0x393   :  { %529 = vsyncpa [#allocation3], 1 }

</bundles_post_ra>
